<compile_context>
chip_gen: v6e
topology: v6e:2x2x1
jax: 0.10.0
libtpu: 0.0.40
codegen_flags: <defaults>
</compile_context>

<pallas_src>
import jax
import jax.numpy as jnp
from jax.experimental import pallas as pl
from jax.experimental.pallas import tpu as pltpu

_LANE = 128
_SUBLANE = 8
_TARGET_BLOCK_BYTES = 4 * 1024 * 1024     # ~4 MiB/block: safe on v5e/v6e/v7x
_SMALL_INPUT_BYTES = 512 * 1024           # below this, XLA fusion wins


def _scale_kernel(scale_ref, x_ref, o_ref):
    # scale_ref: (1,) f32 scalar living in SMEM; x_ref/o_ref: VMEM tiles.
    s = scale_ref[0]
    o_ref[...] = (x_ref[...].astype(jnp.float32) * s).astype(o_ref.dtype)


def _choose_cols(n, max_cols=4096):
    """Largest multiple of 128 that divides n and is <= max_cols (or None)."""
    if n % _LANE != 0:
        return None
    for c in range(max_cols, _LANE - 1, -_LANE):
        if n % c == 0:
            return c
    return None


def _pallas_scale_2d(x2d: jax.Array, scale_arr: jax.Array) -> jax.Array:
    rows, cols = x2d.shape
    itemsize = jnp.dtype(x2d.dtype).itemsize

    # Rows per block: ~_TARGET_BLOCK_BYTES, a multiple of 8 (or full extent,
    # which waives the sublane-divisibility rule).
    tile_r = max(1, _TARGET_BLOCK_BYTES // (cols * itemsize))
    tile_r = (tile_r // _SUBLANE) * _SUBLANE
    if tile_r < _SUBLANE or tile_r >= rows:
        tile_r = rows

    grid = (pl.cdiv(rows, tile_r),)

    return pl.pallas_call(
        _scale_kernel,
        out_shape=jax.ShapeDtypeStruct((rows, cols), x2d.dtype),
        grid_spec=pltpu.PrefetchScalarGridSpec(
            num_scalar_prefetch=0,
            grid=grid,
            in_specs=[
                # Runtime scalar in SMEM: no recompile when `scale` changes.
                pl.BlockSpec(memory_space=pltpu.MemorySpace.SMEM),
                pl.BlockSpec((tile_r, cols), lambda i: (i, 0)),
            ],
            out_specs=pl.BlockSpec((tile_r, cols), lambda i: (i, 0)),
        ),
        compiler_params=pltpu.CompilerParams(
            dimension_semantics=("parallel",),
            vmem_limit_bytes=32 * 1024 * 1024,
        ),
    )(scale_arr, x2d)


def gradient_scale_layer(x: jax.Array, scale, *, force_pallas: bool = False) -> jax.Array:
    """Pallas equivalent of GradientScaleLayer.forward: returns x * scale."""
    orig_shape = x.shape
    n = x.size
    itemsize = jnp.dtype(x.dtype).itemsize

    if n == 0:
        return x * jnp.asarray(scale, dtype=x.dtype)

    # Tiny inputs: pallas_call launch overhead dwarfs the work; let XLA fuse.
    if not force_pallas and n * itemsize < _SMALL_INPUT_BYTES:
        return x * jnp.asarray(scale, dtype=x.dtype)

    scale_arr = jnp.asarray([scale], dtype=jnp.float32)

    cols = _choose_cols(n)
    if cols is not None:
        # Layout-preserving reshape (row-major merge/split): no extra HBM pass.
        out2d = _pallas_scale_2d(x.reshape(n // cols, cols), scale_arr)
        return out2d.reshape(orig_shape)

    # Rare fallback: element count not a multiple of 128 -> pad once.
    cols = 1024
    rows = pl.cdiv(n, cols)
    total = rows * cols
    x_flat = jnp.pad(jnp.ravel(x), (0, total - n))
    out2d = _pallas_scale_2d(x_flat.reshape(rows, cols), scale_arr)
    return out2d.reshape(-1)[:n].reshape(orig_shape)


if __name__ == "__main__":
    key = jax.random.PRNGKey(0)
    scale = 0.5  # GradientScaleLayer(scale=0.5)

    # 1) NCHW conv-style feature map (128-aligned element count -> free-reshape path).
    x = jax.random.normal(key, (2, 4, 16, 16), dtype=jnp.float32)
    y = gradient_scale_layer(x, scale, force_pallas=True)
    y = jax.block_until_ready(y)
    ref = x * scale
    assert y.shape == x.shape and y.dtype == x.dtype
    assert jnp.allclose(y, ref, atol=1e-6, rtol=1e-6)

    # 2) Awkward (non-128-aligned) shape -> exercises the pad fallback path.
    x2 = jax.random.normal(jax.random.PRNGKey(1), (3, 5, 7, 9), dtype=jnp.float32)
    y2 = gradient_scale_layer(x2, scale, force_pallas=True)
    y2 = jax.block_until_ready(y2)
    assert y2.shape == x2.shape and y2.dtype == x2.dtype
    assert jnp.allclose(y2, x2 * scale, atol=1e-6, rtol=1e-6)

    # TODO(synk): PyTorch autograd also scales the backward pass; only the
    # forward multiply is implemented here (matching the module's forward()).
    print("KERNEL_OK")
</pallas_src>

<mosaic_0001>
module attributes {stable_mosaic.version = 11 : i64} {
  func.func @_scale_kernel(%arg0: i32, %arg1: memref<1xf32, #tpu.memory_space<smem>>, %arg2: memref<1x2048xf32, #tpu.memory_space<vmem>>, %arg3: memref<1x2048xf32, #tpu.memory_space<vmem>>) attributes {dimension_semantics = [#tpu.dimension_semantics<parallel>], iteration_bounds = array<i64: 1>, scalar_prefetch = 0 : i64, scratch_operands = 0 : i64, tpu.core_type = #tpu.core_type<tc>, window_params = [{transform_indices = @transform_0, window_bounds = array<i64: 1>}, {transform_indices = @transform_1, window_bounds = array<i64: 1, 2048>}, {transform_indices = @transform_2, window_bounds = array<i64: 1, 2048>}]} {
    %c0 = arith.constant 0 : index
    %0 = memref.load %arg1[%c0] : memref<1xf32, #tpu.memory_space<smem>>
    %c0_0 = arith.constant 0 : index
    %c0_1 = arith.constant 0 : index
    %1 = vector.load %arg2[%c0_0, %c0_1] : memref<1x2048xf32, #tpu.memory_space<vmem>>, vector<1x2048xf32>
    %2 = vector.broadcast %0 : f32 to vector<1x2048xf32>
    %3 = arith.mulf %1, %2 : vector<1x2048xf32>
    %c0_2 = arith.constant 0 : index
    %c0_3 = arith.constant 0 : index
    %4 = vector.load %arg3[%c0_2, %c0_3] : memref<1x2048xf32, #tpu.memory_space<vmem>>, vector<1x2048xf32>
    tpu.vector_store %arg3[%c0_2, %c0_3], %3 {strides = array<i32>} : memref<1x2048xf32, #tpu.memory_space<vmem>>, vector<1x2048xf32>,
    return
  }
  func.func @transform_0(%arg0: i32) -> i32 {
    %c0_i32 = arith.constant 0 : i32
    %c0_i32_0 = arith.constant 0 : i32
    return %c0_i32 : i32
  }
  func.func @transform_1(%arg0: i32) -> (i32, i32) {
    %c0_i32 = arith.constant 0 : i32
    %c0_i32_0 = arith.constant 0 : i32
    return %arg0, %c0_i32 : i32, i32
  }
  func.func @transform_2(%arg0: i32) -> (i32, i32) {
    %c0_i32 = arith.constant 0 : i32
    %c0_i32_0 = arith.constant 0 : i32
    return %arg0, %c0_i32 : i32, i32
  }
}

</mosaic_0001>

<bundles_post_ra>
// kernel: tpu_custom_call.1
= control target key start
LH: loop header
LB: loop body
LE: loop exit
PB: predicated region body
PF: predicated region fallthrough
CT: control target
= control target key end

     0   :  { %8 = vsyncpa [#allocation4], 0  ;;  %s120_s0 = inlined_call_operand.<no memory space> [shape: f32[1], index: 0, kind: input, shape index: {}]   ;;  %s121_s1 = inlined_call_operand.hbm [shape: f32[1,2048], index: 1, kind: input, shape index: {}]   ;;  %s122_s2 = inlined_call_operand.hbm [shape: f32[1,2048], index: 2, kind: output, shape index: {}]  }
   0x1   :  { %9 = vsyncpa [#allocation5], 0  ;;  %s94_s9 = smov [#allocation3]  }
   0x2   :  { %s18_s10 = sshll.u32 %s94_s9, 4  ;;  %s19_s10 = int_to_ptr.vmem [resolvable:$true] %s18_s10 }
   0x3   :  { %s58_s11 = scalar_lea.vmem %s19_s10, 256  ;;  %p63_p1 = scmp.lt.s32.totalorder %s19_s10, %s19_s10 }
   0x4   :  { %p59_p0 = scmp.ne.s32.totalorder %s19_s10, %s58_s11  ;;  %p64_p2 = scmp.lt.s32.totalorder %s58_s11, %s58_s11 }
   0x6   :  { %p65_p3 = por %p64_p2, %p63_p1 }
   0x8   :  { %p66_p4 = pnand %p65_p3, %p59_p0 }
   0xa   :  { %69 = shalt.err (!%p66_p4)
}
   0xb   :  { %21 = dma.hbm_to_vmem [thread:$0]  %s121_s1, 256, %s19_s10, [#allocation4]  }
   0xc   :  { %90 = dma.done.wait [#allocation4], 256  }
   0xd   :  { %91 = vsyncadd [#allocation4], 4294967040  ;;  %v28_v0 = vstv %s120_s0  ;;  %s95_s16 = smov [#allocation6]   ;;  %v26_v1 = vld [vmem:[#allocation3] sm:$0xff]  ;;  %v27_v2 = vld [vmem:[#allocation3 + $0x8] sm:$0xff] }
   0xe   :  { %s39_s17 = sshll.u32 %s95_s16, 4  ;;  %v29_v3 = vmul.f32 %v28_v0, %v26_v1  ;;  %v30_v4 = vmul.f32 %v28_v0, %v27_v2  ;;  %s40_s17 = int_to_ptr.vmem [resolvable:$true] %s39_s17 }
   0xf   :  { %s70_s18 = scalar_lea.vmem %s40_s17, 256  ;;  %p75_p6 = scmp.lt.s32.totalorder %s40_s17, %s40_s17 }
  0x10   :  { %31 = vst [vmem:[#allocation6] sm:$0xff] %v29_v3  ;;  %32 = vst [vmem:[#allocation6 + $0x8] sm:$0xff] %v30_v4  ;;  %p71_p5 = scmp.ne.s32.totalorder %s40_s17, %s70_s18  ;;  %p76_p7 = scmp.lt.s32.totalorder %s70_s18, %s70_s18 }
  0x12   :  { %p77_p8 = por %p76_p7, %p75_p6 }
  0x14   :  { %p78_p9 = pnand %p77_p8, %p71_p5 }
  0x16   :  { %81 = shalt.err (!%p78_p9)
}
  0x17   :  { %42 = dma.vmem_to_hbm [thread:$0]  %s40_s17, 256, %s122_s2, [#allocation5]  }
  0x18   :  { %92 = dma.done.wait [#allocation5], 256  }
  0x19   :  { %93 = vsyncadd [#allocation5], 4294967040 }
  0x1a   :  { %46 = vsyncpa [#allocation4], 1 }
  0x1b   :  { %47 = vsyncpa [#allocation5], 1 }

</bundles_post_ra>
